<compile_context>
chip_gen: v7x
topology: tpu7x:2x2x1
jax: 0.10.0
libtpu: 0.0.40
codegen_flags: <defaults>
</compile_context>

<pallas_src>
import functools

import jax
import jax.numpy as jnp
from jax import lax
from jax.experimental import pallas as pl
from jax.experimental.pallas import tpu as pltpu


def _pick_tile(full, preferred, quantum):
    """Largest legal tile: the full dim (always legal) or `preferred`
    (a multiple of `quantum`; Pallas handles the partial tail block)."""
    del quantum  # `preferred` is already a multiple of it.
    if full <= preferred:
        return full
    return preferred


def _choose_heads_per_block(heads, dim_head):
    """Pick how many heads each flash program processes.

    Prefer 4 (fills v6e/v7x 256-wide stores; still lane-dense and fine on v5e),
    then 2, then any divisor of `heads` that makes the packed width a multiple
    of 128 lanes."""
    for hb in (4, 2, 8, 1):
        if hb <= heads and heads % hb == 0 and (hb * dim_head) % 128 == 0:
            return hb
    for hb in range(heads, 0, -1):
        if heads % hb == 0 and (hb * dim_head) % 128 == 0:
            return hb
    return None


# ----------------------------- Linear (matmul) kernels -----------------------------

def _matmul_kernel(x_ref, w_ref, o_ref):
    # bf16 operands on the MXU (~3x throughput vs f32 passes), f32 accumulation.
    o_ref[...] = jnp.dot(
        x_ref[...].astype(jnp.bfloat16), w_ref[...].astype(jnp.bfloat16),
        preferred_element_type=jnp.float32).astype(o_ref.dtype)


def _matmul_bias_kernel(x_ref, w_ref, b_ref, o_ref):
    acc = jnp.dot(
        x_ref[...].astype(jnp.bfloat16), w_ref[...].astype(jnp.bfloat16),
        preferred_element_type=jnp.float32)
    o_ref[...] = (acc + b_ref[...].astype(jnp.float32)).astype(o_ref.dtype)


def linear_pallas(x, w, b=None, *, tile_m=512, tile_n=256):
    """y = x @ w (+ b).  x: (..., K), w: (K, N_out), b: (N_out,) or None.

    K stays fully resident per block (TSViT dims D<=1024, 3*inner QKV fit VMEM easily).
    # TODO(synk): add a K grid axis + f32 VMEM accumulator for very large K.
    """
    orig_shape = x.shape
    k_dim = orig_shape[-1]
    n_out = w.shape[1]
    x2 = x.reshape(-1, k_dim)
    m = x2.shape[0]

    tm = _pick_tile(m, tile_m, 8)        # M tile: 512 rows preferred
    tn = _pick_tile(n_out, tile_n, 128)  # N tile: lane-dense multiple of 128
    grid = (pl.cdiv(m, tm), pl.cdiv(n_out, tn))

    in_specs = [
        pl.BlockSpec((tm, k_dim), lambda i, j: (i, 0)),
        pl.BlockSpec((k_dim, tn), lambda i, j: (0, j)),
    ]
    operands = [x2, w]
    kernel = _matmul_kernel
    if b is not None:
        in_specs.append(pl.BlockSpec((1, tn), lambda i, j: (0, j)))
        operands.append(b.reshape(1, n_out))
        kernel = _matmul_bias_kernel

    out = pl.pallas_call(
        kernel,
        out_shape=jax.ShapeDtypeStruct((m, n_out), x.dtype),
        grid_spec=pltpu.PrefetchScalarGridSpec(
            num_scalar_prefetch=0,
            grid=grid,
            in_specs=in_specs,
            out_specs=pl.BlockSpec((tm, tn), lambda i, j: (i, j)),
        ),
        compiler_params=pltpu.CompilerParams(
            dimension_semantics=("parallel", "parallel")),
    )(*operands)
    return out.reshape(*orig_shape[:-1], n_out)


# ----------------------------- Flash attention kernel -----------------------------

def _flash_attn_kernel(q_ref, k_ref, v_ref, o_ref, m_sc, l_sc, acc_sc,
                       *, scale, seq_len, tile_k, heads_per_block, dim_head):
    """One head-group (heads_per_block consecutive heads) of flash attention.

    q_ref/k_ref/v_ref blocks are (1, t, hb*dh) slices taken directly from the fused
    qkv buffer; o_ref block is (1, tq, hb*dh) written in 'b n (h d)' layout.
    """
    hb, dh = heads_per_block, dim_head
    ki = pl.program_id(2)

    @pl.when(ki == 0)
    def _():
        m_sc[...] = jnp.full_like(m_sc, -jnp.inf)
        l_sc[...] = jnp.zeros_like(l_sc)
        acc_sc[...] = jnp.zeros_like(acc_sc)

    # Fold the softmax scale into q (tq*hb*dh mults instead of hb*tq*tk), then cast
    # MXU operands to bf16 (f32 accumulation; softmax math stays f32).
    qg = (q_ref[0] * scale).astype(jnp.bfloat16)      # (tq, hb*dh)
    kg = k_ref[0].astype(jnp.bfloat16)                # (tk, hb*dh)
    vg = v_ref[0].astype(jnp.bfloat16)                # (tk, hb*dh)

    kv_rem = seq_len % tile_k
    if kv_rem != 0:
        # Tail-block masking, gated so it costs nothing on non-tail kv steps.
        is_tail = ki == pl.num_programs(2) - 1
        vg = lax.cond(
            is_tail,
            lambda v: jnp.where(
                lax.broadcasted_iota(jnp.int32, v.shape, 0) < kv_rem,
                v, jnp.zeros_like(v)),
            lambda v: v,
            vg)

    for hd in range(hb):                              # static unroll over packed heads
        sl = slice(hd * dh, (hd + 1) * dh)
        qh = qg[:, sl]                                # (tq, dh)
        kh = kg[:, sl]                                # (tk, dh)
        vh = vg[:, sl]                                # (tk, dh)

        # s = (q*scale) @ k^T, contraction over dh, f32 accumulation on the MXU.
        s = lax.dot_general(
            qh, kh, dimension_numbers=(((1,), (1,)), ((), ())),
            preferred_element_type=jnp.float32)       # (tq, tk)

        if kv_rem != 0:
            s = lax.cond(
                is_tail,
                lambda t: jnp.where(
                    lax.broadcasted_iota(jnp.int32, t.shape, 1) < kv_rem,
                    t, jnp.float32(-1e30)),
                lambda t: t,
                s)

        m_prev = m_sc[hd]                             # (tq, 1)
        m_new = jnp.maximum(m_prev, jnp.max(s, axis=-1, keepdims=True))
        alpha = jnp.exp(m_prev - m_new)
        p = jnp.exp(s - m_new)
        l_sc[hd] = alpha * l_sc[hd] + jnp.sum(p, axis=-1, keepdims=True)
        acc_sc[hd] = alpha * acc_sc[hd] + jnp.dot(
            p.astype(jnp.bfloat16), vh, preferred_element_type=jnp.float32)
        m_sc[hd] = m_new

    @pl.when(ki == pl.num_programs(2) - 1)
    def _():
        # Per-row reciprocal on the EUP, then one lane-dense (tq, hb*dh) store.
        parts = [
            (acc_sc[hd] * pl.reciprocal(l_sc[hd], approx=True)).astype(o_ref.dtype)
            for hd in range(hb)
        ]
        o_ref[0] = parts[0] if hb == 1 else jnp.concatenate(parts, axis=-1)


def flash_attention_fused_qkv(qkv, *, batch, seq, heads, dim_head, scale,
                              heads_per_block=None, tile_q=512, tile_k=256):
    """qkv: (b, n, 3*h*dh) fused projection (q | k | v, each head-major).

    Returns (b, n, h*dh) attention output already in 'b n (h d)' layout."""
    b, n, h, dh = batch, seq, heads, dim_head
    if heads_per_block is None:
        heads_per_block = _choose_heads_per_block(h, dh)
    if heads_per_block is None:
        # TODO(synk): support heads/dim_head combos with no 128-lane-aligned packing.
        raise NotImplementedError("no 128-lane-aligned head packing for "
                                  f"heads={h}, dim_head={dh}")
    hb = heads_per_block
    ng = h // hb                  # head groups
    ghd = hb * dh                 # packed lane width per group (multiple of 128)

    tq = _pick_tile(n, tile_q, 8)
    tk = _pick_tile(n, tile_k, 8)
    # Leading grid axis = b * ng head-group programs ('parallel' -> both TCs on v7x).
    grid = (b * ng, pl.cdiv(n, tq), pl.cdiv(n, tk))

    kernel = functools.partial(_flash_attn_kernel, scale=scale, seq_len=n,
                               tile_k=tk, heads_per_block=hb, dim_head=dh)

    # q / k / v head-group slabs are read straight from the qkv buffer: block index g
    # for q, ng + g for k, 2*ng + g for v along the (3*h*dh)/ghd-block last axis.
    return pl.pallas_call(
        kernel,
        out_shape=jax.ShapeDtypeStruct((b, n, h * dh), qkv.dtype),
        grid_spec=pltpu.PrefetchScalarGridSpec(
            num_scalar_prefetch=0,
            grid=grid,
            in_specs=[
                pl.BlockSpec((1, tq, ghd),
                             lambda bg, qi, ki: (bg // ng, qi, bg % ng)),
                pl.BlockSpec((1, tk, ghd),
                             lambda bg, qi, ki: (bg // ng, ki, ng + (bg % ng))),
                pl.BlockSpec((1, tk, ghd),
                             lambda bg, qi, ki: (bg // ng, ki, 2 * ng + (bg % ng))),
            ],
            out_specs=pl.BlockSpec((1, tq, ghd),
                                   lambda bg, qi, ki: (bg // ng, qi, bg % ng)),
            scratch_shapes=[
                pltpu.VMEM((hb, tq, 1), jnp.float32),    # running max per head
                pltpu.VMEM((hb, tq, 1), jnp.float32),    # running denom per head
                pltpu.VMEM((hb, tq, dh), jnp.float32),   # f32 accumulator per head
            ],
        ),
        compiler_params=pltpu.CompilerParams(
            dimension_semantics=("parallel", "parallel", "arbitrary")),
    )(qkv, qkv, qkv)


# ----------------------------------- Attention -----------------------------------

class AttentionPallas:
    """Pallas-TPU port of TSViT Attention (multi-head self-attention)."""

    def __init__(self, dim, heads=8, dim_head=64, dropout=0.0, *,
                 key, param_dtype=jnp.float32):
        inner_dim = dim_head * heads
        self.dim = dim
        self.heads = heads
        self.dim_head = dim_head
        self.scale = dim_head ** -0.5
        self.project_out = not (heads == 1 and dim_head == dim)

        k1, k2, k3 = jax.random.split(key, 3)
        # nn.Linear default init: U(-1/sqrt(fan_in), 1/sqrt(fan_in)).
        bq = 1.0 / (dim ** 0.5)
        self.w_qkv = jax.random.uniform(k1, (dim, inner_dim * 3), param_dtype, -bq, bq)
        if self.project_out:
            bo = 1.0 / (inner_dim ** 0.5)
            self.w_out = jax.random.uniform(k2, (inner_dim, dim), param_dtype, -bo, bo)
            self.b_out = jax.random.uniform(k3, (dim,), param_dtype, -bo, bo)
        else:
            self.w_out = None
            self.b_out = None
        # nn.Dropout(p=0.0) -> identity at inference; omitted.

    def __call__(self, x):
        b, n, _ = x.shape
        qkv = linear_pallas(x, self.w_qkv)                        # (b, n, 3*inner)
        # Flash kernel reads q/k/v head-groups directly from `qkv` and emits
        # (b, n, inner) already in 'b n (h d)' layout -> no split / transpose copies.
        o = flash_attention_fused_qkv(
            qkv, batch=b, seq=n, heads=self.heads, dim_head=self.dim_head,
            scale=self.scale)
        if self.project_out:
            o = linear_pallas(o, self.w_out, self.b_out)
        return o


if __name__ == "__main__":
    key = jax.random.PRNGKey(0)
    kx, kp = jax.random.split(key)

    B, N, D = 2, 128, 128          # batch, tokens, embed dim (small, MXU-friendly)
    HEADS, DIM_HEAD = 8, 64        # module defaults -> inner_dim = 512
    x = jax.random.normal(kx, (B, N, D), dtype=jnp.float32)

    attn = AttentionPallas(D, heads=HEADS, dim_head=DIM_HEAD, key=kp)
    out = jax.block_until_ready(attn(x))

    # Pure-JAX f32 reference of the PyTorch forward.
    qkv = x @ attn.w_qkv
    q, k, v = jnp.split(qkv, 3, axis=-1)

    def heads_(t):
        return t.reshape(B, N, HEADS, DIM_HEAD).transpose(0, 2, 1, 3)

    q, k, v = map(heads_, (q, k, v))
    dots = jnp.einsum('bhid,bhjd->bhij', q, k) * attn.scale
    a = jax.nn.softmax(dots, axis=-1)
    o = jnp.einsum('bhij,bhjd->bhid', a, v)
    o = o.transpose(0, 2, 1, 3).reshape(B, N, HEADS * DIM_HEAD)
    ref = o @ attn.w_out + attn.b_out

    assert out.shape == (B, N, D), out.shape
    # Kernel uses bf16 MXU operands (f32 accumulation), so compare with a loose
    # absolute tolerance against the f32 reference.
    max_err = float(jnp.max(jnp.abs(out - ref)))
    assert max_err < 5e-2, max_err
    print("KERNEL_OK")
</pallas_src>

<mosaic_0001>
module attributes {stable_mosaic.version = 11 : i64} {
  func.func @_matmul_kernel(%arg0: i32, %arg1: i32, %arg2: memref<256x128xf32, #tpu.memory_space<vmem>>, %arg3: memref<128x256xf32, #tpu.memory_space<vmem>>, %arg4: memref<256x256xf32, #tpu.memory_space<vmem>>) attributes {dimension_semantics = [#tpu.dimension_semantics<parallel>, #tpu.dimension_semantics<parallel>], iteration_bounds = array<i64: 1, 6>, scalar_prefetch = 0 : i64, scratch_operands = 0 : i64, tpu.core_type = #tpu.core_type<tc>, window_params = [{transform_indices = @transform_0, window_bounds = array<i64: 256, 128>}, {transform_indices = @transform_1, window_bounds = array<i64: 128, 256>}, {transform_indices = @transform_2, window_bounds = array<i64: 256, 256>}]} {
    %c0 = arith.constant 0 : index
    %c0_0 = arith.constant 0 : index
    %0 = vector.load %arg2[%c0, %c0_0] : memref<256x128xf32, #tpu.memory_space<vmem>>, vector<256x128xf32>
    %1 = arith.truncf %0 : vector<256x128xf32> to vector<256x128xbf16>
    %c0_1 = arith.constant 0 : index
    %c0_2 = arith.constant 0 : index
    %2 = vector.load %arg3[%c0_1, %c0_2] : memref<128x256xf32, #tpu.memory_space<vmem>>, vector<128x256xf32>
    %3 = arith.truncf %2 : vector<128x256xf32> to vector<128x256xbf16>
    %cst = arith.constant dense<0.000000e+00> : vector<256x256xf32>
    %4 = tpu.matmul %1, %3, %cst {dimension_numbers = #tpu.dot_dimension_numbers<[1], [0], [0], [1], [0, 0, 1, 1], [], []>} : vector<256x128xbf16>, vector<128x256xbf16>, vector<256x256xf32> -> vector<256x256xf32>
    %c0_3 = arith.constant 0 : index
    %c0_4 = arith.constant 0 : index
    %5 = vector.load %arg4[%c0_3, %c0_4] : memref<256x256xf32, #tpu.memory_space<vmem>>, vector<256x256xf32>
    tpu.vector_store %arg4[%c0_3, %c0_4], %4 {strides = array<i32>} : memref<256x256xf32, #tpu.memory_space<vmem>>, vector<256x256xf32>,
    return
  }
  func.func @transform_0(%arg0: i32, %arg1: i32) -> (i32, i32) {
    %c0_i32 = arith.constant 0 : i32
    %c0_i32_0 = arith.constant 0 : i32
    return %arg0, %c0_i32 : i32, i32
  }
  func.func @transform_1(%arg0: i32, %arg1: i32) -> (i32, i32) {
    %c0_i32 = arith.constant 0 : i32
    %c0_i32_0 = arith.constant 0 : i32
    return %c0_i32, %arg1 : i32, i32
  }
  func.func @transform_2(%arg0: i32, %arg1: i32) -> (i32, i32) {
    %c0_i32 = arith.constant 0 : i32
    return %arg0, %arg1 : i32, i32
  }
}

</mosaic_0001>

<bundles_post_ra>
// kernel: tpu_custom_call.1
= control target key start
LH: loop header
LB: loop body
LE: loop exit
PB: predicated region body
PF: predicated region fallthrough
CT: control target
= control target key end

     0   :  { %7 = vsyncpa [#allocation3], 0  ;;  %s1291_s0 = inlined_call_operand.hbm [shape: f32[256,128], index: 0, kind: input, shape index: {}]   ;;  %s1292_s1 = inlined_call_operand.hbm [shape: f32[128,1536], index: 1, kind: input, shape index: {}]   ;;  %s1293_s2 = inlined_call_operand.hbm [shape: f32[256,1536], index: 2, kind: output, shape index: {}]  }
   0x1   :  { %8 = vsyncpa [#allocation6], 0 }
   0x2   :  { %10 = vsyncpa [#allocation6 + $0x1], 0 }
   0x3   :  { %11 = vsyncpa [#allocation4], 0 }
   0x4   :  { %13 = vsyncpa [#allocation4 + $0x1], 0  ;;  %s962_s9 = smov 0   ;;  %s964_s10 = smov 0  }
   0x5   :  { %s966_s11 = smov 0   ;;  %s968_s12 = smov 0  }
   0x6   :  { %s970_s13 = smov 0   ;;  %s972_s14 = smov 0  }
   0x7 LB: > { %s672_s15 = sadd.s32 4294967295, %s933_s14   ;;  %s673_s16 = sadd.s32 4294967294, %s933_s14   ;;  %s933_s14 = sphi %s972_s14, %s19_s14   ;;  %s929_s13 = sphi %s970_s13, %s1318_s13   ;;  %s925_s12 = sphi %s968_s12, %s1317_s12   ;;  %s921_s11 = sphi %s966_s11, %s1316_s11   ;;  %s917_s10 = sphi %s964_s10, %s1315_s10   ;;  %s913_s9 = sphi %s962_s9, %s1314_s9  }
   0x8   : > { %p71_p0 = scmp.ne.s32.totalorder %s921_s11, %s917_s10  ;;  %p72_p1 = scmp.eq.s32.totalorder %s933_s14, 0 }
   0x9   : > { %p77_p2 = scmp.ne.s32.totalorder %s917_s10, %s913_s9  ;;  %p999_p3 = scmp.eq.s32.totalorder %s672_s15, 0 }
   0xa   : > { %p1003_p4 = por %p72_p1, %p71_p0  ;;  %p103_p5 = scmp.eq.s32.totalorder %s672_s15, 5 }
   0xb   : > { %s1300_s17 = scalar_select %p999_p3, 1, 0 }
   0xc   : > { %p1009_p6 = por %p999_p3, %p77_p2  ;;  %p109_p7 = scmp.eq.s32.totalorder %s673_s16, 5 }
   0xd   : > { %p1013_p8 = por %p103_p5, %p71_p0  ;;  %p674_p9 = scmp.ge.s32.totalorder %s933_s14, 1 }
   0xe   : > { %s1302_s19 = scalar_select %p1009_p6, 1, 0 }
   0xf   : > { %s1303_s20 = scalar_select %p1013_p8, 1, 0 }
  0x10   : > { %p1018_p10 = por %p109_p7, %p77_p2  ;;  %p116_p11 = scmp.lt.s32.totalorder %s933_s14, 7 }
  0x11   : > { %s935_s23 = smov [#allocation2]   ;;  %p728_p0 = scmp.lt.s32.totalorder %s933_s14, 6 }
  0x12   : > { %s1304_s21 = scalar_select %p1018_p10, 1, 0 }
  0x13   : > { %p1023_p12 = pnand %p674_p9, %p116_p11  ;;  %s131_s24 = sshll.u32 %s935_s23, 4  ;;  %s132_s24 = int_to_ptr.vmem [resolvable:$true] %s131_s24 }
  0x14   : > { %p1038_p2 = pnand %p728_p0, %p1003_p4  ;;  %s28_s27 = sadd.s32 1, %s929_s13 }
  0x15   : > { %s1305_s22 = scalar_select %p1023_p12, 1, 0 }
  0x16   : > { %p715_p13 = pneg %p1023_p12  ;;  %s789_s30 = scalar_lea.hbm %s1291_s0, 4096 }
  0x17   : > { %s1307_s26 = scalar_select %p1038_p2, 1, 0 }
  0x18   : > { %p1032_p1 = pnand %p715_p13, %p999_p3  ;;  %p790_p5 = scmp.ne.s32.totalorder %s1291_s0, %s789_s30 }
  0x19   : > { %p796_p4 = scmp.lt.u32.totalorder %s789_s30, %s1291_s0 }
  0x1a   : > { %p791_p7 = pneg %p1032_p1 }
  0x1c   : > { %p792_p9 = pnand %p791_p7, %p790_p5 }
  0x1e   : > { %p793_p11 = pneg %p792_p9 }
  0x20   : > { %p798_p13 = pnand %p796_p4, %p793_p11 }
  0x22   : > { %801 = shalt.err (!%p798_p13)
}
  0x23   : > { %s802_s7 = scalar_lea.vmem %s132_s24, 4096  ;;  %p810_p6 = scmp.lt.s32.totalorder %s132_s24, %s132_s24 }
  0x24   : > { %p803_p0 = scmp.ne.s32.totalorder %s132_s24, %s802_s7  ;;  %p811_p3 = scmp.lt.s32.totalorder %s802_s7, %s802_s7 }
  0x26   : > { %p805_p10 = pnand %p803_p0, %p791_p7  ;;  %p812_p12 = por %p811_p3, %p810_p6 }
  0x28   : > { %p806_p8 = pneg %p805_p10 }
  0x2a   : > { %p813_p2 = pnand %p812_p12, %p806_p8 }
  0x2c   : > { %816 = shalt.err (!%p813_p2)
}
  0x2d   : > { %s936_s8 = smov 128   ;;  %s937_s15 = smov 8  }
  0x2e   : > { %718 = dma.hbm_to_vmem [thread:$0]  (!%p1032_p1), %s1291_s0, 4096, %s132_s24, [#allocation3], %s936_s8, %s936_s8, %s937_s15  }
  0x2f   : > { %p29_p5 = scmp.ge.s32.totalorder %s28_s27, 6  ;;  %s64_s23 = sadd.s32 1, %s921_s11 }
  0x30   : > { %s145_s28 = sand.u32 1, %s921_s11   ;;  %s689_s3 = sshll.u32 %s929_s13, 8 }
  0x31   : > { %s1320_s27 = smov (%p29_p5, %s28_s27), 0  ;;  %s677_s29 = sshll.u32 %s145_s28, 8 }
  0x32   : > { %s61_s30 = ssub.s32 %s929_s13, %s1320_s27  ;;  %s1069_s25 = scalar_lea.hbm %s1292_s1, %s689_s3 }
  0x33   : > { %p62_p3 = scmp.eq.s32.totalorder %s61_s30, 0  ;;  %s149_s24 = scalar_lea.vmem [#allocation5], %s677_s29 }
  0x34   : > { %s156_s6 = sshll.u32 %s149_s24, 4  ;;  %s1076_s8 = scalar_lea.sflag [#allocation6], %s145_s28  ;;  %s1074_s6 = int_to_ptr.vmem [resolvable:$true] %s156_s6 }
  0x35   : > { %s1072_s7 = scalar_select %p62_p3, %s921_s11, %s64_s23  }
  0x36   : > { %s817_s15 = scalar_lea.hbm %s1069_s25, 4096  ;;  %p1308_p8 = scmp.ne.s32.totalorder %s1307_s26, 0 }
  0x37   : > { %p818_p6 = scmp.ne.s32.totalorder %s1069_s25, %s817_s15  ;;  %s822_s30 = scalar_lea.hbm %s1292_s1, 24576 }
  0x38   : > { %p819_p10 = pneg %p1308_p8  ;;  %p823_p2 = scmp.lt.u32.totalorder %s1069_s25, %s1292_s1 }
  0x39   : > { %p824_p7 = scmp.lt.u32.totalorder %s822_s30, %s817_s15  ;;  %p826_p11 = scmp.lt.u32.totalorder %s817_s15, %s1069_s25 }
  0x3a   : > { %p820_p12 = pnand %p819_p10, %p818_p6 }
  0x3b   : > { %p825_p9 = por %p824_p7, %p823_p2 }
  0x3c   : > { %p821_p1 = pneg %p820_p12 }
  0x3d   : > { %p827_p4 = por %p826_p11, %p825_p9 }
  0x3f   : > { %p828_p13 = pnand %p827_p4, %p821_p1 }
  0x41   : > { %831 = shalt.err (!%p828_p13)
}
  0x42   : > { %s832_s23 = scalar_lea.vmem %s1074_s6, 4096  ;;  %s938_s28 = smov [#allocation5]  }
  0x43   : > { %p833_p0 = scmp.ne.s32.totalorder %s1074_s6, %s832_s23  ;;  %s837_s4 = sshll.u32 %s938_s28, 4  ;;  %s838_s4 = int_to_ptr.vmem [resolvable:$false] %s837_s4 }
  0x44   : > { %s839_s5 = scalar_lea.vmem %s838_s4, 8192  ;;  %p840_p6 = scmp.lt.s32.totalorder %s1074_s6, %s838_s4 }
  0x45   : > { %p835_p5 = pnand %p833_p0, %p819_p10  ;;  %p841_p12 = scmp.lt.s32.totalorder %s839_s5, %s832_s23 }
  0x47   : > { %p836_p3 = pneg %p835_p5  ;;  %p842_p2 = por %p841_p12, %p840_p6 }
  0x49   : > { %p843_p7 = pnand %p842_p2, %p836_p3 }
  0x4b   : > { %846 = shalt.err (!%p843_p7)
}
  0x4c   : > { %s939_s24 = smov 1536   ;;  %s940_s15 = smov 256  }
  0x4d   : > { %s941_s16 = smov 16   ;;  %p1309_p10 = scmp.ne.s32.totalorder %s1305_s22, 0 }
  0x4e   : > { %722 = dma.hbm_to_vmem [thread:$0]  (!%p1308_p8), %s1069_s25, 4096, %s1074_s6, %s1076_s8, %s939_s24, %s940_s15, %s941_s16  }
  0x4f   : > { %168 = sbr.rel (%p1309_p10) target bundleno = 413 (0x19d), region = 28  ;;  %p1310_p1 = scmp.ne.s32.totalorder (!%p1309_p10), %s1300_s17, 0 }
  0x56   : > { %900 = dma.done.wait (%p1310_p1), [#allocation3], 4096  }
  0x57   : > { %902 = vsyncadd (%p1310_p1), [#allocation3], 4294963200  ;;  %s1111_s18 = sand.u32 1, %s917_s10   ;;  %p1311_p8 = scmp.ne.s32.totalorder %s1302_s19, 0 }
  0x58   : > { %s682_s30 = sshll.u32 %s1111_s18, 8  ;;  %s175_s29 = scalar_lea.sflag [#allocation6], %s1111_s18 }
  0x59   : > { %s1115_s3 = scalar_lea.vmem [#allocation5], %s682_s30 }
  0x5a   : > { %904 = dma.done.wait (%p1311_p8), %s175_s29, 4096  }
  0x5b   : > { %906 = vsyncadd (%p1311_p8), %s175_s29, 4294963200  ;;  %v942_v0 = vmov 0   ;;  %v253_v1 = vld [vmem:[%s1115_s3 + $0x8] sm:$0xff]  ;;  %v255_v2 = vld [vmem:[%s1115_s3 + $0x18] sm:$0xff]  ;;  %s683_s17 = sshll.u32 %s1111_s18, 9  ;;  %s690_s22 = sshll.u32 %s925_s12, 8 }
  0x5c   : > { %332 = vmatprep.mubr.bf16.mxu0 %v942_v0  ;;  %412 = vmatprep.mubr.bf16.mxu1 %v942_v0  ;;  %v252_v3 = vld [vmem:[%s1115_s3] sm:$0xff]  ;;  %v285_v4 = vpack.c.bf16 %v255_v2, %v253_v1  ;;  %v254_v5 = vld [vmem:[%s1115_s3 + $0x10] sm:$0xff]  ;;  %v257_v6 = vld [vmem:[%s1115_s3 + $0x28] sm:$0xff]  ;;  %s1170_s19 = scalar_lea.vmem [#allocation7], %s683_s17  ;;  %s1233_s8 = scalar_lea.hbm %s1293_s2, %s690_s22 }
  0x5d   : > { %v259_v7 = vld [vmem:[%s1115_s3 + $0x38] sm:$0xff]  ;;  %v284_v8 = vpack.c.bf16 %v254_v5, %v252_v3  ;;  %v256_v10 = vld [vmem:[%s1115_s3 + $0x20] sm:$0xff]  ;;  %v258_v11 = vld [vmem:[%s1115_s3 + $0x30] sm:$0xff]  ;;  %s574_s26 = sshll.u32 %s1170_s19, 4  ;;  %s558_s12 = scalar_lea.sflag [#allocation4], %s1111_s18  ;;  %s1237_s26 = int_to_ptr.vmem [resolvable:$true] %s574_s26 }
  0x5e   : > { %v287_v9 = vpack.c.bf16 %v259_v7, %v257_v6  ;;  %v261_v12 = vld [vmem:[%s1115_s3 + $0x48] sm:$0xff]  ;;  %300 = vmatprep.subr.bf16.mxu0 %v285_v4  ;;  %691 = vmatprep.subr.bf16.mxu1 %v285_v4  ;;  %v263_v13 = vld [vmem:[%s1115_s3 + $0x58] sm:$0xff]  ;;  %v286_v14 = vpack.c.bf16 %v258_v11, %v256_v10  ;;  %v260_v16 = vld [vmem:[%s1115_s3 + $0x40] sm:$0xff]  ;;  %s847_s23 = scalar_lea.vmem %s1237_s26, 8192  ;;  %p1312_p11 = scmp.ne.s32.totalorder %s1303_s20, 0 }
  0x5f   : > { %301 = vmatpush1.bf16.msra.mxu0 %v284_v8  ;;  %699 = vmatpush1.bf16.msra.mxu1 %v284_v8  ;;  %v289_v15 = vpack.c.bf16 %v263_v13, %v261_v12  ;;  %v262_v17 = vld [vmem:[%s1115_s3 + $0x50] sm:$0xff]  ;;  %v265_v18 = vld [vmem:[%s1115_s3 + $0x68] sm:$0xff]  ;;  %v267_v19 = vld [vmem:[%s1115_s3 + $0x78] sm:$0xff]  ;;  %p848_p9 = scmp.ne.s32.totalorder %s1237_s26, %s847_s23  ;;  %s943_s28 = smov [#allocation7]  }
  0x60   : > { %302 = vmatprep.subr.bf16.mxu0 %v287_v9  ;;  %692 = vmatprep.subr.bf16.mxu1 %v287_v9  ;;  %v288_v20 = vpack.c.bf16 %v262_v17, %v260_v16  ;;  %v291_v21 = vpack.c.bf16 %v267_v19, %v265_v18  ;;  %v264_v22 = vld [vmem:[%s1115_s3 + $0x60] sm:$0xff]  ;;  %v266_v23 = vld [vmem:[%s1115_s3 + $0x70] sm:$0xff]  ;;  %v269_v24 = vld [vmem:[%s1115_s3 + $0x88] sm:$0xff]  ;;  %s851_s4 = sshll.u32 %s943_s28, 4  ;;  %s852_s4 = int_to_ptr.vmem [resolvable:$false] %s851_s4 }
  0x61   : > { %v271_v25 = vld [vmem:[%s1115_s3 + $0x98] sm:$0xff]  ;;  %v290_v26 = vpack.c.bf16 %v266_v23, %v264_v22  ;;  %v268_v28 = vld [vmem:[%s1115_s3 + $0x80] sm:$0xff]  ;;  %v270_v29 = vld [vmem:[%s1115_s3 + $0x90] sm:$0xff]  ;;  %p849_p4 = pnand %p848_p9, %p1312_p11  ;;  %s853_s5 = scalar_lea.vmem %s852_s4, 16384 }
  0x62   : > { %v293_v27 = vpack.c.bf16 %v271_v25, %v269_v24  ;;  %v273_v30 = vld [vmem:[%s1115_s3 + $0xa8] sm:$0xff]  ;;  %v275_v31 = vld [vmem:[%s1115_s3 + $0xb8] sm:$0xff]  ;;  %v292_v32 = vpack.c.bf16 %v270_v29, %v268_v28  ;;  %v272_v34 = vld [vmem:[%s1115_s3 + $0xa0] sm:$0xff]  ;;  %p854_p0 = scmp.lt.s32.totalorder %s1237_s26, %s852_s4  ;;  %p855_p5 = scmp.lt.s32.totalorder %s853_s5, %s847_s23 }
  0x63   : > { %303 = vmatpush1.bf16.msra.mxu0 %v286_v14  ;;  %700 = vmatpush1.bf16.msra.mxu1 %v286_v14  ;;  %v295_v33 = vpack.c.bf16 %v275_v31, %v273_v30  ;;  %v274_v35 = vld [vmem:[%s1115_s3 + $0xb0] sm:$0xff]  ;;  %v277_v36 = vld [vmem:[%s1115_s3 + $0xc8] sm:$0xff]  ;;  %v279_v37 = vld [vmem:[%s1115_s3 + $0xd8] sm:$0xff]  ;;  %p850_p13 = pneg %p849_p4 }
  0x64   : > { %304 = vmatprep.subr.bf16.mxu0 %v289_v15  ;;  %693 = vmatprep.subr.bf16.mxu1 %v289_v15  ;;  %v294_v38 = vpack.c.bf16 %v274_v35, %v272_v34  ;;  %v297_v39 = vpack.c.bf16 %v279_v37, %v277_v36  ;;  %v276_v40 = vld [vmem:[%s1115_s3 + $0xc0] sm:$0xff]  ;;  %v278_v41 = vld [vmem:[%s1115_s3 + $0xd0] sm:$0xff]  ;;  %v281_v42 = vld [vmem:[%s1115_s3 + $0xe8] sm:$0xff]  ;;  %p856_p3 = por %p855_p5, %p854_p0 }
  0x65   : > { %v283_v43 = vld [vmem:[%s1115_s3 + $0xf8] sm:$0xff]  ;;  %v296_v44 = vpack.c.bf16 %v278_v41, %v276_v40  ;;  %v280_v46 = vld [vmem:[%s1115_s3 + $0xe0] sm:$0xff]  ;;  %v282_v47 = vld [vmem:[%s1115_s3 + $0xf0] sm:$0xff] }
  0x66   : > { %v299_v45 = vpack.c.bf16 %v283_v43, %v281_v42  ;;  %v204_v48 = vld [vmem:[#allocation2] sm:$0xff]  ;;  %v298_v49 = vpack.c.bf16 %v282_v47, %v280_v46  ;;  %v205_v50 = vld [vmem:[#allocation2 + $0x8] sm:$0xff]  ;;  %v206_v55 = vld [vmem:[#allocation2 + $0x10] sm:$0xff]  ;;  %p857_p6 = pnand %p856_p3, %p850_p13 }
  0x67   : > { %305 = vmatpush1.bf16.msra.mxu0 %v288_v20  ;;  %701 = vmatpush1.bf16.msra.mxu1 %v288_v20  ;;  %v220_v51 = vld [vmem:[#allocation2 + $0x80] sm:$0xff]  ;;  %v221_v52 = vld [vmem:[#allocation2 + $0x88] sm:$0xff]  ;;  %v236_v53 = vpack.c.bf16 %v205_v50, %v204_v48  ;;  %v207_v56 = vld [vmem:[#allocation2 + $0x18] sm:$0xff] }
  0x68   : > { %306 = vmatprep.subr.bf16.mxu0 %v291_v21  ;;  %694 = vmatprep.subr.bf16.mxu1 %v291_v21  ;;  %v244_v54 = vpack.c.bf16 %v221_v52, %v220_v51  ;;  %v222_v57 = vld [vmem:[#allocation2 + $0x90] sm:$0xff]  ;;  %v223_v58 = vld [vmem:[#allocation2 + $0x98] sm:$0xff]  ;;  %v237_v59 = vpack.c.bf16 %v207_v56, %v206_v55  ;;  %v208_v61 = vld [vmem:[#allocation2 + $0x20] sm:$0xff] }
  0x69   : > { %v245_v60 = vpack.c.bf16 %v223_v58, %v222_v57  ;;  %v209_v62 = vld [vmem:[#allocation2 + $0x28] sm:$0xff]  ;;  %v224_v63 = vld [vmem:[#allocation2 + $0xa0] sm:$0xff]  ;;  %v210_v4 = vld [vmem:[#allocation2 + $0x30] sm:$0xff] }
  0x6a   : > { %v225_v1 = vld [vmem:[#allocation2 + $0xa8] sm:$0xff]  ;;  %v238_v2 = vpack.c.bf16 %v209_v62, %v208_v61  ;;  %v211_v5 = vld [vmem:[#allocation2 + $0x38] sm:$0xff]  ;;  %v226_v6 = vld [vmem:[#allocation2 + $0xb0] sm:$0xff] }
  0x6b   : > { %307 = vmatpush1.bf16.msra.mxu0 %v290_v26  ;;  %702 = vmatpush1.bf16.msra.mxu1 %v290_v26  ;;  %v246_v3 = vpack.c.bf16 %v225_v1, %v224_v63  ;;  %v227_v7 = vld [vmem:[#allocation2 + $0xb8] sm:$0xff]  ;;  %v239_v8 = vpack.c.bf16 %v211_v5, %v210_v4  ;;  %v212_v10 = vld [vmem:[#allocation2 + $0x40] sm:$0xff]  ;;  %v213_v11 = vld [vmem:[#allocation2 + $0x48] sm:$0xff] }
  0x6c   : > { %308 = vmatprep.subr.bf16.mxu0 %v293_v27  ;;  %695 = vmatprep.subr.bf16.mxu1 %v293_v27  ;;  %v247_v9 = vpack.c.bf16 %v227_v7, %v226_v6  ;;  %v228_v12 = vld [vmem:[#allocation2 + $0xc0] sm:$0xff]  ;;  %v229_v13 = vld [vmem:[#allocation2 + $0xc8] sm:$0xff]  ;;  %v240_v14 = vpack.c.bf16 %v213_v11, %v212_v10  ;;  %v214_v16 = vld [vmem:[#allocation2 + $0x50] sm:$0xff] }
  0x6d   : > { %v248_v15 = vpack.c.bf16 %v229_v13, %v228_v12  ;;  %v215_v17 = vld [vmem:[#allocation2 + $0x58] sm:$0xff]  ;;  %v230_v18 = vld [vmem:[#allocation2 + $0xd0] sm:$0xff]  ;;  %v216_v22 = vld [vmem:[#allocation2 + $0x60] sm:$0xff] }
  0x6e   : > { %v231_v19 = vld [vmem:[#allocation2 + $0xd8] sm:$0xff]  ;;  %v241_v20 = vpack.c.bf16 %v215_v17, %v214_v16  ;;  %v217_v23 = vld [vmem:[#allocation2 + $0x68] sm:$0xff]  ;;  %v232_v24 = vld [vmem:[#allocation2 + $0xe0] sm:$0xff] }
  0x6f   : > { %309 = vmatpush1.bf16.msra.mxu0 %v292_v32  ;;  %703 = vmatpush1.bf16.msra.mxu1 %v292_v32  ;;  %v249_v21 = vpack.c.bf16 %v231_v19, %v230_v18  ;;  %v233_v25 = vld [vmem:[#allocation2 + $0xe8] sm:$0xff]  ;;  %v242_v26 = vpack.c.bf16 %v217_v23, %v216_v22  ;;  %v218_v28 = vld [vmem:[#allocation2 + $0x70] sm:$0xff]  ;;  %v219_v29 = vld [vmem:[#allocation2 + $0x78] sm:$0xff] }
  0x70   : > { %310 = vmatprep.subr.bf16.mxu0 %v295_v33  ;;  %696 = vmatprep.subr.bf16.mxu1 %v295_v33  ;;  %v250_v27 = vpack.c.bf16 %v233_v25, %v232_v24  ;;  %v234_v30 = vld [vmem:[#allocation2 + $0xf0] sm:$0xff]  ;;  %v235_v31 = vld [vmem:[#allocation2 + $0xf8] sm:$0xff]  ;;  %v243_v32 = vpack.c.bf16 %v219_v29, %v218_v28 }
  0x71   : > { %v251_v33 = vpack.c.bf16 %v235_v31, %v234_v30 }
  0x73   : > { %311 = vmatpush1.bf16.msra.mxu0 %v294_v38  ;;  %704 = vmatpush1.bf16.msra.mxu1 %v294_v38 }
  0x74   : > { %312 = vmatprep.subr.bf16.mxu0 %v297_v39  ;;  %697 = vmatprep.subr.bf16.mxu1 %v297_v39 }
  0x77   : > { %313 = vmatpush1.bf16.msra.mxu0 %v296_v44  ;;  %705 = vmatpush1.bf16.msra.mxu1 %v296_v44 }
  0x78   : > { %314 = vmatprep.subr.bf16.mxu0 %v299_v45  ;;  %698 = vmatprep.subr.bf16.mxu1 %v299_v45 }
  0x7b   : > { %315 = vmatpush1.bf16.msra.mxu0 %v298_v49  ;;  %706 = vmatpush1.bf16.msra.mxu1 %v298_v49 }
  0x7e   : > { %333 = vmatmul.mubr.bf16.vlgmr.msra.gmra.mrb[0].mxu0 %v236_v53  ;;  %413 = vmatmul.mubr.bf16.vlgmr.msra.gmra.mrb[0].mxu1 %v244_v54 }
  0x7f   : > { %342 = vmatprep.mubr.bf16.mxu0 %v942_v0  ;;  %422 = vmatprep.mubr.bf16.mxu1 %v942_v0 }
  0x86   : > { %343 = vmatmul.mubr.bf16.gmra.mrb[4].mxu0 %v237_v59  ;;  %423 = vmatmul.mubr.bf16.gmra.mrb[4].mxu1 %v245_v60 }
  0x87   : > { %352 = vmatprep.mubr.bf16.mxu0 %v942_v0  ;;  %432 = vmatprep.mubr.bf16.mxu1 %v942_v0 }
  0x8e   : > { %353 = vmatmul.mubr.bf16.gmra.mrb[8].mxu0 %v238_v2  ;;  %433 = vmatmul.mubr.bf16.gmra.mrb[8].mxu1 %v246_v3 }
  0x8f   : > { %362 = vmatprep.mubr.bf16.mxu0 %v942_v0  ;;  %442 = vmatprep.mubr.bf16.mxu1 %v942_v0 }
  0x96   : > { %363 = vmatmul.mubr.bf16.gmra.mrb[12].mxu0 %v239_v8  ;;  %443 = vmatmul.mubr.bf16.gmra.mrb[12].mxu1 %v247_v9 }
  0x97   : > { %372 = vmatprep.mubr.bf16.mxu0 %v942_v0  ;;  %452 = vmatprep.mubr.bf16.mxu1 %v942_v0 }
  0x9e   : > { %373 = vmatmul.mubr.bf16.gmra.mrb[16].mxu0 %v240_v14  ;;  %453 = vmatmul.mubr.bf16.gmra.mrb[16].mxu1 %v248_v15 }
  0x9f   : > { %382 = vmatprep.mubr.bf16.mxu0 %v942_v0  ;;  %462 = vmatprep.mubr.bf16.mxu1 %v942_v0 }
  0xa6   : > { %383 = vmatmul.mubr.bf16.gmra.mrb[20].mxu0 %v241_v20  ;;  %463 = vmatmul.mubr.bf16.gmra.mrb[20].mxu1 %v249_v21 }
  0xa7   : > { %392 = vmatprep.mubr.bf16.mxu0 %v942_v0  ;;  %472 = vmatprep.mubr.bf16.mxu1 %v942_v0 }
  0xae   : > { %393 = vmatmul.mubr.bf16.gmra.mrb[24].mxu0 %v242_v26  ;;  %473 = vmatmul.mubr.bf16.gmra.mrb[24].mxu1 %v250_v27 }
  0xaf   : > { %402 = vmatprep.mubr.bf16.mxu0 %v942_v0  ;;  %482 = vmatprep.mubr.bf16.mxu1 %v942_v0 }
  0xb6   : > { %403 = vmatmul.mubr.bf16.gmra.mrb[28].mxu0 %v243_v32  ;;  %483 = vmatmul.mubr.bf16.gmra.mrb[28].mxu1 %v251_v33 }
 0x151   : > { %v334_v34 = vpop.f32.mrb[0].mxu0  ;;  %v414_v35 = vpop.f32.mrb[0].mxu1 }
 0x152   : > { %493 = vst [vmem:[%s1170_s19] sm:$0xff] %v334_v34  ;;  %525 = vst [vmem:[%s1170_s19 + $0x100] sm:$0xff] %v414_v35  ;;  %v336_v0 = vpop.f32.mrb[1].mxu0  ;;  %v416_v36 = vpop.f32.mrb[1].mxu1 }
 0x153   : > { %494 = vst [vmem:[%s1170_s19 + $0x8] sm:$0xff] %v336_v0  ;;  %526 = vst [vmem:[%s1170_s19 + $0x108] sm:$0xff] %v416_v36  ;;  %v338_v37 = vpop.f32.mrb[2].mxu0  ;;  %v418_v38 = vpop.f32.mrb[2].mxu1 }
 0x154   : > { %495 = vst [vmem:[%s1170_s19 + $0x10] sm:$0xff] %v338_v37  ;;  %527 = vst [vmem:[%s1170_s19 + $0x110] sm:$0xff] %v418_v38  ;;  %v340_v39 = vpop.f32.mrb[3].mxu0  ;;  %v420_v40 = vpop.f32.mrb[3].mxu1 }
 0x155   : > { %496 = vst [vmem:[%s1170_s19 + $0x18] sm:$0xff] %v340_v39  ;;  %528 = vst [vmem:[%s1170_s19 + $0x118] sm:$0xff] %v420_v40 }
 0x159   : > { %v344_v41 = vpop.f32.mrb[4].mxu0  ;;  %v424_v42 = vpop.f32.mrb[4].mxu1 }
 0x15a   : > { %497 = vst [vmem:[%s1170_s19 + $0x20] sm:$0xff] %v344_v41  ;;  %529 = vst [vmem:[%s1170_s19 + $0x120] sm:$0xff] %v424_v42  ;;  %v346_v43 = vpop.f32.mrb[5].mxu0  ;;  %v426_v44 = vpop.f32.mrb[5].mxu1 }
 0x15b   : > { %498 = vst [vmem:[%s1170_s19 + $0x28] sm:$0xff] %v346_v43  ;;  %530 = vst [vmem:[%s1170_s19 + $0x128] sm:$0xff] %v426_v44  ;;  %v348_v45 = vpop.f32.mrb[6].mxu0  ;;  %v428_v46 = vpop.f32.mrb[6].mxu1 }
 0x15c   : > { %499 = vst [vmem:[%s1170_s19 + $0x30] sm:$0xff] %v348_v45  ;;  %531 = vst [vmem:[%s1170_s19 + $0x130] sm:$0xff] %v428_v46  ;;  %v350_v47 = vpop.f32.mrb[7].mxu0  ;;  %v430_v48 = vpop.f32.mrb[7].mxu1 }
 0x15d   : > { %500 = vst [vmem:[%s1170_s19 + $0x38] sm:$0xff] %v350_v47  ;;  %532 = vst [vmem:[%s1170_s19 + $0x138] sm:$0xff] %v430_v48 }
 0x161   : > { %v354_v49 = vpop.f32.mrb[8].mxu0  ;;  %v434_v50 = vpop.f32.mrb[8].mxu1 }
 0x162   : > { %501 = vst [vmem:[%s1170_s19 + $0x40] sm:$0xff] %v354_v49  ;;  %533 = vst [vmem:[%s1170_s19 + $0x140] sm:$0xff] %v434_v50  ;;  %v356_v51 = vpop.f32.mrb[9].mxu0  ;;  %v436_v52 = vpop.f32.mrb[9].mxu1 }
 0x163   : > { %502 = vst [vmem:[%s1170_s19 + $0x48] sm:$0xff] %v356_v51  ;;  %534 = vst [vmem:[%s1170_s19 + $0x148] sm:$0xff] %v436_v52  ;;  %v358_v53 = vpop.f32.mrb[10].mxu0  ;;  %v438_v54 = vpop.f32.mrb[10].mxu1 }
 0x164   : > { %503 = vst [vmem:[%s1170_s19 + $0x50] sm:$0xff] %v358_v53  ;;  %535 = vst [vmem:[%s1170_s19 + $0x150] sm:$0xff] %v438_v54  ;;  %v360_v55 = vpop.f32.mrb[11].mxu0  ;;  %v440_v56 = vpop.f32.mrb[11].mxu1 }
 0x165   : > { %504 = vst [vmem:[%s1170_s19 + $0x58] sm:$0xff] %v360_v55  ;;  %536 = vst [vmem:[%s1170_s19 + $0x158] sm:$0xff] %v440_v56 }
 0x169   : > { %v364_v57 = vpop.f32.mrb[12].mxu0  ;;  %v444_v58 = vpop.f32.mrb[12].mxu1 }
 0x16a   : > { %505 = vst [vmem:[%s1170_s19 + $0x60] sm:$0xff] %v364_v57  ;;  %537 = vst [vmem:[%s1170_s19 + $0x160] sm:$0xff] %v444_v58  ;;  %v366_v59 = vpop.f32.mrb[13].mxu0  ;;  %v446_v60 = vpop.f32.mrb[13].mxu1 }
 0x16b   : > { %506 = vst [vmem:[%s1170_s19 + $0x68] sm:$0xff] %v366_v59  ;;  %538 = vst [vmem:[%s1170_s19 + $0x168] sm:$0xff] %v446_v60  ;;  %v368_v61 = vpop.f32.mrb[14].mxu0  ;;  %v448_v62 = vpop.f32.mrb[14].mxu1 }
 0x16c   : > { %507 = vst [vmem:[%s1170_s19 + $0x70] sm:$0xff] %v368_v61  ;;  %539 = vst [vmem:[%s1170_s19 + $0x170] sm:$0xff] %v448_v62  ;;  %v370_v63 = vpop.f32.mrb[15].mxu0  ;;  %v450_v1 = vpop.f32.mrb[15].mxu1 }
 0x16d   : > { %508 = vst [vmem:[%s1170_s19 + $0x78] sm:$0xff] %v370_v63  ;;  %540 = vst [vmem:[%s1170_s19 + $0x178] sm:$0xff] %v450_v1 }
 0x171   : > { %v374_v2 = vpop.f32.mrb[16].mxu0  ;;  %v454_v3 = vpop.f32.mrb[16].mxu1 }
 0x172   : > { %509 = vst [vmem:[%s1170_s19 + $0x80] sm:$0xff] %v374_v2  ;;  %541 = vst [vmem:[%s1170_s19 + $0x180] sm:$0xff] %v454_v3  ;;  %v376_v4 = vpop.f32.mrb[17].mxu0  ;;  %v456_v5 = vpop.f32.mrb[17].mxu1 }
 0x173   : > { %510 = vst [vmem:[%s1170_s19 + $0x88] sm:$0xff] %v376_v4  ;;  %542 = vst [vmem:[%s1170_s19 + $0x188] sm:$0xff] %v456_v5  ;;  %v378_v6 = vpop.f32.mrb[18].mxu0  ;;  %v458_v7 = vpop.f32.mrb[18].mxu1 }
 0x174   : > { %511 = vst [vmem:[%s1170_s19 + $0x90] sm:$0xff] %v378_v6  ;;  %543 = vst [vmem:[%s1170_s19 + $0x190] sm:$0xff] %v458_v7  ;;  %v380_v8 = vpop.f32.mrb[19].mxu0  ;;  %v460_v9 = vpop.f32.mrb[19].mxu1 }
 0x175   : > { %512 = vst [vmem:[%s1170_s19 + $0x98] sm:$0xff] %v380_v8  ;;  %544 = vst [vmem:[%s1170_s19 + $0x198] sm:$0xff] %v460_v9 }
 0x179   : > { %v384_v10 = vpop.f32.mrb[20].mxu0  ;;  %v464_v11 = vpop.f32.mrb[20].mxu1 }
 0x17a   : > { %513 = vst [vmem:[%s1170_s19 + $0xa0] sm:$0xff] %v384_v10  ;;  %545 = vst [vmem:[%s1170_s19 + $0x1a0] sm:$0xff] %v464_v11  ;;  %v386_v12 = vpop.f32.mrb[21].mxu0  ;;  %v466_v13 = vpop.f32.mrb[21].mxu1 }
 0x17b   : > { %514 = vst [vmem:[%s1170_s19 + $0xa8] sm:$0xff] %v386_v12  ;;  %546 = vst [vmem:[%s1170_s19 + $0x1a8] sm:$0xff] %v466_v13  ;;  %v388_v14 = vpop.f32.mrb[22].mxu0  ;;  %v468_v15 = vpop.f32.mrb[22].mxu1 }
 0x17c   : > { %515 = vst [vmem:[%s1170_s19 + $0xb0] sm:$0xff] %v388_v14  ;;  %547 = vst [vmem:[%s1170_s19 + $0x1b0] sm:$0xff] %v468_v15  ;;  %v390_v16 = vpop.f32.mrb[23].mxu0  ;;  %v470_v17 = vpop.f32.mrb[23].mxu1 }
 0x17d   : > { %516 = vst [vmem:[%s1170_s19 + $0xb8] sm:$0xff] %v390_v16  ;;  %548 = vst [vmem:[%s1170_s19 + $0x1b8] sm:$0xff] %v470_v17 }
 0x181   : > { %v394_v18 = vpop.f32.mrb[24].mxu0  ;;  %v474_v19 = vpop.f32.mrb[24].mxu1 }
 0x182   : > { %517 = vst [vmem:[%s1170_s19 + $0xc0] sm:$0xff] %v394_v18  ;;  %549 = vst [vmem:[%s1170_s19 + $0x1c0] sm:$0xff] %v474_v19  ;;  %v396_v20 = vpop.f32.mrb[25].mxu0  ;;  %v476_v21 = vpop.f32.mrb[25].mxu1 }
 0x183   : > { %518 = vst [vmem:[%s1170_s19 + $0xc8] sm:$0xff] %v396_v20  ;;  %550 = vst [vmem:[%s1170_s19 + $0x1c8] sm:$0xff] %v476_v21  ;;  %v398_v22 = vpop.f32.mrb[26].mxu0  ;;  %v478_v23 = vpop.f32.mrb[26].mxu1 }
 0x184   : > { %519 = vst [vmem:[%s1170_s19 + $0xd0] sm:$0xff] %v398_v22  ;;  %551 = vst [vmem:[%s1170_s19 + $0x1d0] sm:$0xff] %v478_v23  ;;  %v400_v24 = vpop.f32.mrb[27].mxu0  ;;  %v480_v25 = vpop.f32.mrb[27].mxu1 }
 0x185   : > { %520 = vst [vmem:[%s1170_s19 + $0xd8] sm:$0xff] %v400_v24  ;;  %552 = vst [vmem:[%s1170_s19 + $0x1d8] sm:$0xff] %v480_v25 }
 0x189   : > { %v404_v26 = vpop.f32.mrb[28].mxu0  ;;  %v484_v27 = vpop.f32.mrb[28].mxu1 }
 0x18a   : > { %521 = vst [vmem:[%s1170_s19 + $0xe0] sm:$0xff] %v404_v26  ;;  %553 = vst [vmem:[%s1170_s19 + $0x1e0] sm:$0xff] %v484_v27  ;;  %v406_v28 = vpop.f32.mrb[29].mxu0  ;;  %v486_v29 = vpop.f32.mrb[29].mxu1 }
 0x18b   : > { %522 = vst [vmem:[%s1170_s19 + $0xe8] sm:$0xff] %v406_v28  ;;  %554 = vst [vmem:[%s1170_s19 + $0x1e8] sm:$0xff] %v486_v29  ;;  %v408_v30 = vpop.f32.mrb[30].mxu0  ;;  %v488_v31 = vpop.f32.mrb[30].mxu1 }
 0x18c   : > { %523 = vst [vmem:[%s1170_s19 + $0xf0] sm:$0xff] %v408_v30  ;;  %555 = vst [vmem:[%s1170_s19 + $0x1f0] sm:$0xff] %v488_v31  ;;  %v410_v32 = vpop.f32.mrb[31].mxu0  ;;  %v490_v33 = vpop.f32.mrb[31].mxu1 }
 0x18d   : > { %524 = vst [vmem:[%s1170_s19 + $0xf8] sm:$0xff] %v410_v32  ;;  %556 = vst [vmem:[%s1170_s19 + $0x1f8] sm:$0xff] %v490_v33 }
 0x18e   : > { %860 = shalt.err (!%p857_p6)
}
 0x18f   : > { %s861_s24 = scalar_lea.hbm %s1233_s8, 8192  ;;  %s865_s30 = scalar_lea.hbm %s1293_s2, 49152 }
 0x190   : > { %p862_p12 = scmp.ne.s32.totalorder %s1233_s8, %s861_s24  ;;  %p866_p10 = scmp.lt.u32.totalorder %s1233_s8, %s1293_s2 }
 0x191   : > { %p867_p1 = scmp.lt.u32.totalorder %s865_s30, %s861_s24  ;;  %p869_p9 = scmp.lt.u32.totalorder %s861_s24, %s1233_s8 }
 0x192   : > { %p863_p2 = pnand %p862_p12, %p1312_p11 }
 0x193   : > { %p868_p8 = por %p867_p1, %p866_p10 }
 0x194   : > { %p864_p7 = pneg %p863_p2 }
 0x195   : > { %p870_p4 = por %p869_p9, %p868_p8 }
 0x197   : > { %p871_p13 = pnand %p870_p4, %p864_p7 }
 0x199   : > { %874 = shalt.err (!%p871_p13)
}
 0x19a   : > { %s944_s17 = smov 256   ;;  %s945_s19 = smov 1536  }
 0x19b   : > { %s946_s22 = smov 16  }
 0x19c   : > { %713 = dma.vmem_to_hbm [thread:$0]  (%p1312_p11), %s1237_s26, 8192, %s1233_s8, %s558_s12, %s944_s17, %s945_s19, %s946_s22  }
 0x19d PF: > { %p730_p0 = scmp.ge.s32.totalorder %s933_s14, 2  ;;  %s589_s25 = sand.u32 1, %s913_s9  }
 0x19e   : > { %p1313_p5 = scmp.ne.s32.totalorder %s1304_s21, 0  ;;  %s590_s6 = scalar_lea.sflag [#allocation4], %s589_s25 }
 0x1a0   : > { %p724_p3 = pnand %p730_p0, %p1313_p5 }
 0x1a2   : > { %908 = dma.done.wait (!%p724_p3), %s590_s6, 8192  }
 0x1a3   : > { %910 = vsyncadd (!%p724_p3), %s590_s6, 4294959104  ;;  %s19_s14 = sadd.s32 1, %s933_s14   ;;  %s1314_s9 = smov %s917_s10 }
 0x1a4   : > { %p16_p6 = scmp.ge.s32.totalorder %s19_s14, 8   ;;  %s1315_s10 = smov %s921_s11 }
 0x1a5   : > { %s1316_s11 = smov %s1072_s7  ;;  %s1317_s12 = smov %s929_s13 }
 0x1a6   : > { %s1318_s13 = smov %s1320_s27  ;;  %18 = sbr.rel (!%p16_p6) target bundleno = 7 (0x7), region = 79 }
 0x1ad   :  { %595 = vsyncpa [#allocation3], 1 }
 0x1ae   :  { %597 = vsyncpa [#allocation3 + $0x1], 1 }
 0x1af   :  { %598 = vsyncpa [#allocation6], 1 }
 0x1b0   :  { %600 = vsyncpa [#allocation6 + $0x1], 1 }
 0x1b1   :  { %601 = vsyncpa [#allocation4], 1 }
 0x1b2   :  { %603 = vsyncpa [#allocation4 + $0x1], 1 }

</bundles_post_ra>
